<compile_context>
chip_gen: v7x
topology: tpu7x:2x2x1
jax: 0.10.0
libtpu: 0.0.40
codegen_flags: <defaults>
</compile_context>

<pallas_src>
import functools

import jax
import jax.numpy as jnp
from jax.experimental import pallas as pl
from jax.experimental.pallas import tpu as pltpu

_LN_EPS = 1e-5  # PyTorch nn.LayerNorm default

# (d_in, d_out) per branch; hidden == out for these MLPs.
_BRANCH_DIMS = [(7, 14), (1, 2), (3, 6), (13, 26)]
_IN_TOT = sum(d for d, _ in _BRANCH_DIMS)    # 24
_OUT_TOT = sum(o for _, o in _BRANCH_DIMS)   # 48

_TB_MAX = 1024  # batch rows per tile; ~small vs any VMEM budget (v5e/v6e/v7x)


def fish_swim_kernel(x_ref, w1_ref, b1_ref, w2_ref, b2_ref, g_ref, bt_ref,
                     segmean_ref, o_ref):
    """Fused block-diagonal MLP + per-segment LayerNorm for one batch tile."""
    x = x_ref[...]                                             # (TB, 24)

    h = jnp.dot(x, w1_ref[...], preferred_element_type=jnp.float32)
    h = jnp.maximum(h + b1_ref[...], 0.0)                      # (TB, 48)
    h = jnp.dot(h, w2_ref[...], preferred_element_type=jnp.float32)
    h = h + b2_ref[...]                                        # (TB, 48)

    # Segment-wise LayerNorm via the block-diagonal averaging matrix:
    # (h @ segmean)[:, j] == mean of h over the segment lane j belongs to.
    mu = jnp.dot(h, segmean_ref[...], preferred_element_type=jnp.float32)
    c = h - mu
    var = jnp.dot(c * c, segmean_ref[...], preferred_element_type=jnp.float32)
    y = c * jax.lax.rsqrt(var + _LN_EPS)

    o_ref[...] = (y * g_ref[...] + bt_ref[...]).astype(o_ref.dtype)


def _init_branch_params(key, d_in, d_hidden, d_out):
    """Deterministic synthetic parameters (PyTorch-Linear-like scaling)."""
    k1, k2, k3, k4 = jax.random.split(key, 4)
    s1 = 1.0 / jnp.sqrt(d_in)
    s2 = 1.0 / jnp.sqrt(d_hidden)
    w1 = jax.random.uniform(k1, (d_in, d_hidden), jnp.float32, -s1, s1)
    b1 = jax.random.uniform(k2, (1, d_hidden), jnp.float32, -s1, s1)
    w2 = jax.random.uniform(k3, (d_hidden, d_out), jnp.float32, -s2, s2)
    b2 = jax.random.uniform(k4, (1, d_out), jnp.float32, -s2, s2)
    gamma = jnp.ones((1, d_out), jnp.float32)   # nn.LayerNorm default init
    beta = jnp.zeros((1, d_out), jnp.float32)
    return [w1, b1, w2, b2, gamma, beta]


def init_fish_swim_params(seed=0):
    key = jax.random.PRNGKey(seed)
    ks = jax.random.split(key, 4)
    params = []
    for k, (di, do) in zip(ks, _BRANCH_DIMS):
        params += _init_branch_params(k, di, do, do)
    return params


def pack_fish_swim_params(params):
    """Pack per-branch params into block-diagonal fused matrices (done once)."""
    w1 = jnp.zeros((_IN_TOT, _OUT_TOT), jnp.float32)
    w2 = jnp.zeros((_OUT_TOT, _OUT_TOT), jnp.float32)
    seg = jnp.zeros((_OUT_TOT, _OUT_TOT), jnp.float32)
    b1s, b2s, gs, bts = [], [], [], []
    ri = ci = 0
    for i, (di, do) in enumerate(_BRANCH_DIMS):
        bw1, bb1, bw2, bb2, g, bt = params[i * 6:(i + 1) * 6]
        w1 = w1.at[ri:ri + di, ci:ci + do].set(bw1)
        w2 = w2.at[ci:ci + do, ci:ci + do].set(bw2)
        seg = seg.at[ci:ci + do, ci:ci + do].set(1.0 / do)
        b1s.append(bb1)
        b2s.append(bb2)
        gs.append(g)
        bts.append(bt)
        ri += di
        ci += do
    b1 = jnp.concatenate(b1s, axis=-1)
    b2 = jnp.concatenate(b2s, axis=-1)
    gamma = jnp.concatenate(gs, axis=-1)
    beta = jnp.concatenate(bts, axis=-1)
    return w1, b1, w2, b2, gamma, beta, seg


@jax.jit
def fish_swim_forward(joint_angles, upright, target, velocity,
                      w1, b1, w2, b2, gamma, beta, segmean):
    # Match PyTorch: if upright is 1-D, unsqueeze a trailing feature dim.
    if upright.ndim == 1:
        upright = upright[:, None]

    # One (B, 24) input stream instead of four narrow padded ones.
    x24 = jnp.concatenate(
        [joint_angles.astype(jnp.float32),
         upright.astype(jnp.float32),
         target.astype(jnp.float32),
         velocity.astype(jnp.float32)], axis=-1)

    B = x24.shape[0]
    # Tile the batch: full-B block when small (always layout-legal since it
    # equals the array dim), otherwise 1024-row blocks (divisible by 8) with a
    # cdiv grid; the partial last block is masked by Pallas on writeback.
    TB = B if B <= _TB_MAX else _TB_MAX
    grid = (pl.cdiv(B, TB),)

    row_spec = pl.BlockSpec((TB, _IN_TOT), lambda i: (i, 0))
    out_spec = pl.BlockSpec((TB, _OUT_TOT), lambda i: (i, 0))
    # Parameters: constant index_map -> resident across the whole grid.
    const = lambda shape: pl.BlockSpec(shape, lambda i: (0, 0))

    return pl.pallas_call(
        fish_swim_kernel,
        out_shape=jax.ShapeDtypeStruct((B, _OUT_TOT), jnp.float32),
        grid=grid,
        in_specs=[
            row_spec,                         # x24
            const((_IN_TOT, _OUT_TOT)),       # w1 block-diagonal
            const((1, _OUT_TOT)),             # b1
            const((_OUT_TOT, _OUT_TOT)),      # w2 block-diagonal
            const((1, _OUT_TOT)),             # b2
            const((1, _OUT_TOT)),             # gamma
            const((1, _OUT_TOT)),             # beta
            const((_OUT_TOT, _OUT_TOT)),      # segment-mean matrix
        ],
        out_specs=out_spec,
        compiler_params=pltpu.CompilerParams(
            dimension_semantics=("parallel",)),
    )(x24, w1, b1, w2, b2, gamma, beta, segmean)


def _reference(joint_angles, upright, target, velocity, params):
    """Pure-JAX reference replicating the PyTorch module branch by branch."""
    if upright.ndim == 1:
        upright = upright[:, None]
    xs = (joint_angles, upright, target, velocity)
    outs = []
    for i, x in enumerate(xs):
        w1, b1, w2, b2, g, bt = params[i * 6:(i + 1) * 6]
        h = jnp.maximum(x @ w1 + b1, 0.0)
        h = h @ w2 + b2
        mu = jnp.mean(h, axis=-1, keepdims=True)
        var = jnp.mean((h - mu) ** 2, axis=-1, keepdims=True)
        h = (h - mu) / jnp.sqrt(var + _LN_EPS)
        outs.append(h * g + bt)
    return jnp.concatenate(outs, axis=-1)


if __name__ == "__main__":
    B = 8
    key = jax.random.PRNGKey(0)
    k_ja, k_up, k_tg, k_vel = jax.random.split(key, 4)

    joint_angles = jax.random.normal(k_ja, (B, 7), jnp.float32)
    upright = jax.random.normal(k_up, (B,), jnp.float32)      # 1-D case
    target = jax.random.normal(k_tg, (B, 3), jnp.float32)
    velocity = jax.random.normal(k_vel, (B, 13), jnp.float32)

    params = init_fish_swim_params(seed=0)
    packed = pack_fish_swim_params(params)

    out = fish_swim_forward(joint_angles, upright, target, velocity, *packed)
    out = jax.block_until_ready(out)

    ref = _reference(joint_angles, upright, target, velocity, params)
    assert out.shape == (B, 48), out.shape
    assert jnp.allclose(out, ref, atol=1e-4, rtol=1e-4), (
        float(jnp.max(jnp.abs(out - ref))))

    print("KERNEL_OK")
</pallas_src>

<mosaic_0001>
module attributes {stable_mosaic.version = 11 : i64} {
  func.func @fish_swim_kernel(%arg0: i32, %arg1: memref<8x24xf32, #tpu.memory_space<vmem>>, %arg2: memref<24x48xf32, #tpu.memory_space<vmem>>, %arg3: memref<1x48xf32, #tpu.memory_space<vmem>>, %arg4: memref<48x48xf32, #tpu.memory_space<vmem>>, %arg5: memref<1x48xf32, #tpu.memory_space<vmem>>, %arg6: memref<1x48xf32, #tpu.memory_space<vmem>>, %arg7: memref<1x48xf32, #tpu.memory_space<vmem>>, %arg8: memref<48x48xf32, #tpu.memory_space<vmem>>, %arg9: memref<8x48xf32, #tpu.memory_space<vmem>>) attributes {dimension_semantics = [#tpu.dimension_semantics<parallel>], iteration_bounds = array<i64: 1>, scalar_prefetch = 0 : i64, scratch_operands = 0 : i64, tpu.core_type = #tpu.core_type<tc>, window_params = [{transform_indices = @transform_0, window_bounds = array<i64: 8, 24>}, {pipeline_mode = #tpu.pipeline_mode<synchronous>, transform_indices = @transform_1, window_bounds = array<i64: 24, 48>}, {pipeline_mode = #tpu.pipeline_mode<synchronous>, transform_indices = @transform_2, window_bounds = array<i64: 1, 48>}, {pipeline_mode = #tpu.pipeline_mode<synchronous>, transform_indices = @transform_3, window_bounds = array<i64: 48, 48>}, {pipeline_mode = #tpu.pipeline_mode<synchronous>, transform_indices = @transform_4, window_bounds = array<i64: 1, 48>}, {pipeline_mode = #tpu.pipeline_mode<synchronous>, transform_indices = @transform_5, window_bounds = array<i64: 1, 48>}, {pipeline_mode = #tpu.pipeline_mode<synchronous>, transform_indices = @transform_6, window_bounds = array<i64: 1, 48>}, {pipeline_mode = #tpu.pipeline_mode<synchronous>, transform_indices = @transform_7, window_bounds = array<i64: 48, 48>}, {transform_indices = @transform_8, window_bounds = array<i64: 8, 48>}]} {
    %c0 = arith.constant 0 : index
    %c0_0 = arith.constant 0 : index
    %0 = vector.load %arg1[%c0, %c0_0] : memref<8x24xf32, #tpu.memory_space<vmem>>, vector<8x24xf32>
    %c0_1 = arith.constant 0 : index
    %c0_2 = arith.constant 0 : index
    %1 = vector.load %arg2[%c0_1, %c0_2] : memref<24x48xf32, #tpu.memory_space<vmem>>, vector<24x48xf32>
    %cst = arith.constant dense<0.000000e+00> : vector<8x48xf32>
    %2 = tpu.matmul %0, %1, %cst {dimension_numbers = #tpu.dot_dimension_numbers<[1], [0], [0], [1], [0, 0, 1, 1], [], []>} : vector<8x24xf32>, vector<24x48xf32>, vector<8x48xf32> -> vector<8x48xf32>
    %c0_3 = arith.constant 0 : index
    %c0_4 = arith.constant 0 : index
    %3 = vector.load %arg3[%c0_3, %c0_4] : memref<1x48xf32, #tpu.memory_space<vmem>>, vector<1x48xf32>
    %4 = vector.broadcast %3 : vector<1x48xf32> to vector<8x48xf32>
    %5 = arith.addf %2, %4 : vector<8x48xf32>
    %cst_5 = arith.constant 0.000000e+00 : f32
    %6 = vector.broadcast %cst_5 : f32 to vector<8x48xf32>
    %7 = arith.maximumf %5, %6 : vector<8x48xf32>
    %c0_6 = arith.constant 0 : index
    %c0_7 = arith.constant 0 : index
    %8 = vector.load %arg4[%c0_6, %c0_7] : memref<48x48xf32, #tpu.memory_space<vmem>>, vector<48x48xf32>
    %cst_8 = arith.constant dense<0.000000e+00> : vector<8x48xf32>
    %9 = tpu.matmul %7, %8, %cst_8 {dimension_numbers = #tpu.dot_dimension_numbers<[1], [0], [0], [1], [0, 0, 1, 1], [], []>} : vector<8x48xf32>, vector<48x48xf32>, vector<8x48xf32> -> vector<8x48xf32>
    %c0_9 = arith.constant 0 : index
    %c0_10 = arith.constant 0 : index
    %10 = vector.load %arg5[%c0_9, %c0_10] : memref<1x48xf32, #tpu.memory_space<vmem>>, vector<1x48xf32>
    %11 = vector.broadcast %10 : vector<1x48xf32> to vector<8x48xf32>
    %12 = arith.addf %9, %11 : vector<8x48xf32>
    %c0_11 = arith.constant 0 : index
    %c0_12 = arith.constant 0 : index
    %13 = vector.load %arg8[%c0_11, %c0_12] : memref<48x48xf32, #tpu.memory_space<vmem>>, vector<48x48xf32>
    %cst_13 = arith.constant dense<0.000000e+00> : vector<8x48xf32>
    %14 = tpu.matmul %12, %13, %cst_13 {dimension_numbers = #tpu.dot_dimension_numbers<[1], [0], [0], [1], [0, 0, 1, 1], [], []>} : vector<8x48xf32>, vector<48x48xf32>, vector<8x48xf32> -> vector<8x48xf32>
    %15 = arith.subf %12, %14 : vector<8x48xf32>
    %16 = arith.mulf %15, %15 : vector<8x48xf32>
    %c0_14 = arith.constant 0 : index
    %c0_15 = arith.constant 0 : index
    %17 = vector.load %arg8[%c0_14, %c0_15] : memref<48x48xf32, #tpu.memory_space<vmem>>, vector<48x48xf32>
    %cst_16 = arith.constant dense<0.000000e+00> : vector<8x48xf32>
    %18 = tpu.matmul %16, %17, %cst_16 {dimension_numbers = #tpu.dot_dimension_numbers<[1], [0], [0], [1], [0, 0, 1, 1], [], []>} : vector<8x48xf32>, vector<48x48xf32>, vector<8x48xf32> -> vector<8x48xf32>
    %cst_17 = arith.constant 9.99999974E-6 : f32
    %19 = vector.broadcast %cst_17 : f32 to vector<8x48xf32>
    %20 = arith.addf %18, %19 : vector<8x48xf32>
    %21 = math.rsqrt %20 : vector<8x48xf32>
    %22 = arith.mulf %15, %21 : vector<8x48xf32>
    %c0_18 = arith.constant 0 : index
    %c0_19 = arith.constant 0 : index
    %23 = vector.load %arg6[%c0_18, %c0_19] : memref<1x48xf32, #tpu.memory_space<vmem>>, vector<1x48xf32>
    %24 = vector.broadcast %23 : vector<1x48xf32> to vector<8x48xf32>
    %25 = arith.mulf %22, %24 : vector<8x48xf32>
    %c0_20 = arith.constant 0 : index
    %c0_21 = arith.constant 0 : index
    %26 = vector.load %arg7[%c0_20, %c0_21] : memref<1x48xf32, #tpu.memory_space<vmem>>, vector<1x48xf32>
    %27 = vector.broadcast %26 : vector<1x48xf32> to vector<8x48xf32>
    %28 = arith.addf %25, %27 : vector<8x48xf32>
    %c0_22 = arith.constant 0 : index
    %c0_23 = arith.constant 0 : index
    %29 = vector.load %arg9[%c0_22, %c0_23] : memref<8x48xf32, #tpu.memory_space<vmem>>, vector<8x48xf32>
    tpu.vector_store %arg9[%c0_22, %c0_23], %28 {strides = array<i32>} : memref<8x48xf32, #tpu.memory_space<vmem>>, vector<8x48xf32>,
    return
  }
  func.func @transform_0(%arg0: i32) -> (i32, i32) {
    %c0_i32 = arith.constant 0 : i32
    %c0_i32_0 = arith.constant 0 : i32
    return %arg0, %c0_i32 : i32, i32
  }
  func.func @transform_1(%arg0: i32) -> (i32, i32) {
    %c0_i32 = arith.constant 0 : i32
    %c0_i32_0 = arith.constant 0 : i32
    %c0_i32_1 = arith.constant 0 : i32
    return %c0_i32, %c0_i32_0 : i32, i32
  }
  func.func @transform_2(%arg0: i32) -> (i32, i32) {
    %c0_i32 = arith.constant 0 : i32
    %c0_i32_0 = arith.constant 0 : i32
    %c0_i32_1 = arith.constant 0 : i32
    return %c0_i32, %c0_i32_0 : i32, i32
  }
  func.func @transform_3(%arg0: i32) -> (i32, i32) {
    %c0_i32 = arith.constant 0 : i32
    %c0_i32_0 = arith.constant 0 : i32
    %c0_i32_1 = arith.constant 0 : i32
    return %c0_i32, %c0_i32_0 : i32, i32
  }
  func.func @transform_4(%arg0: i32) -> (i32, i32) {
    %c0_i32 = arith.constant 0 : i32
    %c0_i32_0 = arith.constant 0 : i32
    %c0_i32_1 = arith.constant 0 : i32
    return %c0_i32, %c0_i32_0 : i32, i32
  }
  func.func @transform_5(%arg0: i32) -> (i32, i32) {
    %c0_i32 = arith.constant 0 : i32
    %c0_i32_0 = arith.constant 0 : i32
    %c0_i32_1 = arith.constant 0 : i32
    return %c0_i32, %c0_i32_0 : i32, i32
  }
  func.func @transform_6(%arg0: i32) -> (i32, i32) {
    %c0_i32 = arith.constant 0 : i32
    %c0_i32_0 = arith.constant 0 : i32
    %c0_i32_1 = arith.constant 0 : i32
    return %c0_i32, %c0_i32_0 : i32, i32
  }
  func.func @transform_7(%arg0: i32) -> (i32, i32) {
    %c0_i32 = arith.constant 0 : i32
    %c0_i32_0 = arith.constant 0 : i32
    %c0_i32_1 = arith.constant 0 : i32
    return %c0_i32, %c0_i32_0 : i32, i32
  }
  func.func @transform_8(%arg0: i32) -> (i32, i32) {
    %c0_i32 = arith.constant 0 : i32
    %c0_i32_0 = arith.constant 0 : i32
    return %arg0, %c0_i32 : i32, i32
  }
}

</mosaic_0001>

<bundles_post_ra>
// kernel: fish_swim_forward.1
= control target key start
LH: loop header
LB: loop body
LE: loop exit
PB: predicated region body
PF: predicated region fallthrough
CT: control target
= control target key end

     0   :  { %13 = vsyncpa [#allocation3], 0  ;;  %s813_s0 = inlined_call_operand.vmem [shape: f32[8,24], index: 0, kind: input, shape index: {}]   ;;  %s814_s1 = inlined_call_operand.hbm [shape: f32[24,48], index: 1, kind: input, shape index: {}]   ;;  %s815_s2 = inlined_call_operand.vmem [shape: f32[1,48], index: 2, kind: input, shape index: {}]   ;;  %s816_s3 = inlined_call_operand.vmem [shape: f32[48,48], index: 3, kind: input, shape index: {}]   ;;  %s817_s4 = inlined_call_operand.vmem [shape: f32[1,48], index: 4, kind: input, shape index: {}]   ;;  %s818_s5 = inlined_call_operand.hbm [shape: f32[1,48], index: 5, kind: input, shape index: {}]   ;;  %s819_s6 = inlined_call_operand.hbm [shape: f32[1,48], index: 6, kind: input, shape index: {}]   ;;  %s820_s7 = inlined_call_operand.vmem [shape: f32[48,48], index: 7, kind: input, shape index: {}]   ;;  %s821_s8 = inlined_call_operand.hbm [shape: f32[8,48], index: 8, kind: output, shape index: {}]  }
   0x1   :  { %14 = vsyncpa [#allocation6], 0 }
   0x2   :  { %15 = vsyncpa [#allocation4], 0  ;;  %s651_s27 = smov [#allocation5]   ;;  %s652_s29 = smov [#allocation2]  }
   0x3   :  { %s42_s28 = sshll.u32 %s651_s27, 4  ;;  %s23_s30 = sshll.u32 %s652_s29, 4  ;;  %s43_s28 = int_to_ptr.vmem [resolvable:$true] %s42_s28  ;;  %s705_s30 = int_to_ptr.vmem [resolvable:$true] %s23_s30 }
   0x4   :  { %s557_s11 = scalar_lea.hbm %s818_s5, 16 }
   0x5   :  { %p558_p0 = scmp.ne.s32.totalorder %s818_s5, %s557_s11  ;;  %p561_p1 = scmp.lt.u32.totalorder %s557_s11, %s818_s5 }
   0x7   :  { %p563_p2 = pnand %p561_p1, %p558_p0 }
   0x9   :  { %566 = shalt.err (!%p563_p2)
}
   0xa   :  { %s567_s16 = scalar_lea.vmem %s43_s28, 16  ;;  %s571_s17 = scalar_lea.vmem %s43_s28, 32 }
   0xb   :  { %p568_p3 = scmp.ne.s32.totalorder %s43_s28, %s567_s16  ;;  %p572_p4 = scmp.lt.s32.totalorder %s43_s28, %s43_s28 }
   0xc   :  { %p573_p5 = scmp.lt.s32.totalorder %s571_s17, %s567_s16 }
   0xe   :  { %p574_p6 = por %p573_p5, %p572_p4 }
  0x10   :  { %p575_p7 = pnand %p574_p6, %p568_p3 }
  0x12   :  { %578 = shalt.err (!%p575_p7)
}
  0x13   :  { %45 = dma.hbm_to_vmem [thread:$0]  %s818_s5, 16, %s43_s28, [#allocation6]  }
  0x14   :  { %s579_s22 = scalar_lea.hbm %s814_s1, 384 }
  0x15   :  { %p580_p8 = scmp.ne.s32.totalorder %s814_s1, %s579_s22  ;;  %p583_p9 = scmp.lt.u32.totalorder %s579_s22, %s814_s1 }
  0x17   :  { %p585_p10 = pnand %p583_p9, %p580_p8 }
  0x19   :  { %588 = shalt.err (!%p585_p10)
}
  0x1a   :  { %s589_s27 = scalar_lea.vmem %s705_s30, 384  ;;  %p594_p12 = scmp.lt.s32.totalorder %s705_s30, %s705_s30 }
  0x1b   :  { %p590_p11 = scmp.ne.s32.totalorder %s705_s30, %s589_s27  ;;  %p595_p13 = scmp.lt.s32.totalorder %s589_s27, %s589_s27 }
  0x1d   :  { %p596_p0 = por %p595_p13, %p594_p12 }
  0x1f   :  { %p597_p1 = pnand %p596_p0, %p590_p11 }
  0x21   :  { %600 = shalt.err (!%p597_p1)
}
  0x22   :  { %s653_s5 = smov 128   ;;  %s654_s28 = smov 8  }
  0x23   :  { %29 = dma.hbm_to_vmem [thread:$0]  %s814_s1, 384, %s705_s30, [#allocation3], %s653_s5, %s653_s5, %s654_s28  }
  0x24   :  { %s655_s10 = smov [#allocation7]   ;;  %s601_s14 = scalar_lea.hbm %s819_s6, 16 }
  0x25   :  { %s52_s11 = sshll.u32 %s655_s10, 4  ;;  %p602_p2 = scmp.ne.s32.totalorder %s819_s6, %s601_s14  ;;  %s53_s11 = int_to_ptr.vmem [resolvable:$true] %s52_s11 }
  0x26   :  { %p605_p3 = scmp.lt.u32.totalorder %s601_s14, %s819_s6 }
  0x28   :  { %p607_p4 = pnand %p605_p3, %p602_p2 }
  0x2a   :  { %610 = shalt.err (!%p607_p4)
}
  0x2b   :  { %s611_s19 = scalar_lea.vmem %s53_s11, 16  ;;  %s615_s1 = scalar_lea.vmem %s53_s11, 32 }
  0x2c   :  { %p612_p5 = scmp.ne.s32.totalorder %s53_s11, %s611_s19  ;;  %p616_p6 = scmp.lt.s32.totalorder %s53_s11, %s53_s11 }
  0x2d   :  { %p617_p7 = scmp.lt.s32.totalorder %s615_s1, %s611_s19 }
  0x2f   :  { %p618_p8 = por %p617_p7, %p616_p6 }
  0x31   :  { %p619_p9 = pnand %p618_p8, %p612_p5 }
  0x33   :  { %622 = shalt.err (!%p619_p9)
}
  0x34   :  { %55 = dma.hbm_to_vmem [thread:$0]  %s819_s6, 16, %s53_s11, [#allocation6]  }
  0x35   :  { %645 = dma.done.wait [#allocation3], 384  }
  0x36   :  { %646 = vsyncadd [#allocation3], 4294966912 }
  0x37   :  { %647 = dma.done.wait [#allocation6], 32  }
  0x38   :  { %648 = vsyncadd [#allocation6], 4294967264  ;;  %v656_v0 = vmov 0.0|0.0   ;;  %vm657_vm0 = vmmov 0   ;;  %v658_v1 = vmov 0.0   ;;  %v68_v2 = vld [vmem:[#allocation2] sm:$0xff] }
  0x39   :  { %516 = vmatprep.subr.bf16.mxu0 %v656_v0  ;;  %468 = vmatprep.mubr.msk.f32.mxu0 %vm657_vm0, %v658_v1  ;;  %v69_v3 = vld [vmem:[#allocation2 + $0x8] sm:$0xff]  ;;  %v153_v5 = vld [vmem:[%s816_s3] sm:$0xff]  ;;  %v155_v8 = vld [vmem:[%s816_s3 + $0x10] sm:$0xff]  ;;  %vm78_vm1 = vcmask 195584   ;;  %vm166_vm2 = vcmask 392192  }
  0x3a   :  { %519 = vmatprep.subr.bf16.mxu1 %v656_v0  ;;  %483 = vmatprep.mubr.msk.f32.mxu1 %vm657_vm0, %v658_v1  ;;  %v517_v4 = vpack.c.bf16 %v69_v3, %v68_v2  ;;  %v154_v6 = vld [vmem:[%s816_s3 + $0x8] sm:$0xff]  ;;  %v156_v9 = vld [vmem:[%s816_s3 + $0x18] sm:$0xff]  ;;  %v70_v10 = vld [vmem:[#allocation2 + $0x10] sm:$0xff] }
  0x3b   :  { %v520_v7 = vpack.c.bf16 %v154_v6, %v153_v5  ;;  %v523_v11 = vpack.c.bf16 %v156_v9, %v155_v8  ;;  %v67_v12 = vld [vmem:[%s813_s0] sm:$0xff]  ;;  %v158_v14 = vld [vmem:[%s816_s3 + $0x28] sm:$0xff]  ;;  %v242_v18 = vld [vmem:[%s820_s7 + $0x10] sm:$0xff] }
  0x3c   :  { %518 = vmatpush3.bf16.msra.mxu0 %v517_v4  ;;  %v157_v13 = vld [vmem:[%s816_s3 + $0x20] sm:$0xff]  ;;  %v241_v17 = vld [vmem:[%s820_s7 + $0x8] sm:$0xff]  ;;  %v243_v20 = vld [vmem:[%s820_s7 + $0x18] sm:$0xff] }
  0x3d   :  { %466 = vmatprep.subr.mxu0 %v658_v1  ;;  %521 = vmatpush3.bf16.msra.mxu1 %v520_v7  ;;  %v526_v15 = vpack.c.bf16 %v158_v14, %v157_v13  ;;  %v240_v16 = vld [vmem:[%s820_s7] sm:$0xff]  ;;  %v532_v21 = vpack.c.bf16 %v243_v20, %v242_v18  ;;  %v245_v28 = vld [vmem:[%s820_s7 + $0x28] sm:$0xff]  ;;  %v435_v42 = vld [vmem:[#allocation5] ss:$0 sm:$0xff] }
  0x3e   :  { %522 = vmatprep.subr.bf16.mxu1 %v656_v0  ;;  %v529_v19 = vpack.c.bf16 %v241_v17, %v240_v16  ;;  %v429_v22 = vld [vmem:[%s815_s2] ss:$0 sm:$0xff]  ;;  %v436_v44 = vld [vmem:[#allocation7] ss:$0 sm:$0xff] }
  0x3f   :  { %v244_v27 = vld [vmem:[%s820_s7 + $0x20] sm:$0xff] }
  0x40   :  { %467 = vmatpush3.msra.mxu0 %v70_v10  ;;  %v535_v29 = vpack.c.bf16 %v245_v28, %v244_v27  ;;  %v431_v30 = vld [vmem:[%s817_s4] ss:$0 sm:$0xff]  ;;  %s659_s4 = smov [#allocation8]  }
  0x41   :  { %469 = vmatmul.mubr.msk.f32.vlgmr.msra.gmra.mrb[0].mxu0 %vm78_vm1, %v67_v12  ;;  %524 = vmatpush3.bf16.msra.mxu1 %v523_v11  ;;  %s419_s7 = sshll.u32 %s659_s4, 4  ;;  %s420_s7 = int_to_ptr.vmem [resolvable:$true] %s419_s7 }
  0x42   :  { %525 = vmatprep.subr.bf16.mxu1 %v656_v0  ;;  %528 = vmatprep.subr.bf16.mxu0 %v656_v0  ;;  %s623_s6 = scalar_lea.vmem %s420_s7, 128  ;;  %p628_p11 = scmp.lt.s32.totalorder %s420_s7, %s420_s7 }
  0x43   :  { %498 = vmatprep.mubr.msk.f32.mxu0 %vm657_vm0, %v658_v1  ;;  %530 = vmatpush3.bf16.msra.mxu0 %v529_v19  ;;  %p624_p10 = scmp.ne.s32.totalorder %s420_s7, %s623_s6  ;;  %p629_p12 = scmp.lt.s32.totalorder %s623_s6, %s623_s6 }
  0x44   :  { %531 = vmatprep.subr.bf16.mxu0 %v656_v0 }
  0x45   :  { %527 = vmatpush3.bf16.msra.mxu1 %v526_v15  ;;  %p630_p13 = por %p629_p12, %p628_p11 }
  0x46   :  { %537 = vmatprep.subr.bf16.mxu1 %v656_v0 }
  0x47   :  { %533 = vmatpush3.bf16.msra.mxu0 %v532_v21  ;;  %p631_p0 = pnand %p630_p13, %p624_p10 }
  0x48   :  { %534 = vmatprep.subr.bf16.mxu0 %v656_v0 }
  0x4b   :  { %536 = vmatpush3.bf16.msra.mxu0 %v535_v29 }
 0x114   :  { %v148_v23 = vpop.f32.mrb[0].mxu0 }
 0x115   :  { %v149_v24 = vadd.f32 %v429_v22, %v148_v23  ;;  %v470_v25 = vpop.f32.mrb[1].mxu0 }
 0x117   :  { %v152_v26 = vmax.f32 %v149_v24, 0.0 }
 0x119   :  { %484 = vmatmul.mubr.msk.f32.vlgmr.msra.gmra.mrb[0].mxu1 %vm166_vm2, %v152_v26 }
 0x11a   :  { %539 = vmatpush3.bf16.msra.mxu1 %v529_v19  ;;  %513 = vmatprep.mubr.msk.f32.mxu1 %vm657_vm0, %v658_v1 }
 0x11b   :  { %540 = vmatprep.subr.bf16.mxu1 %v656_v0 }
 0x11e   :  { %542 = vmatpush3.bf16.msra.mxu1 %v532_v21 }
 0x11f   :  { %543 = vmatprep.subr.bf16.mxu1 %v656_v0 }
 0x122   :  { %545 = vmatpush3.bf16.msra.mxu1 %v535_v29 }
 0x1ec   :  { %v236_v31 = vpop.f32.mrb[0].mxu1 }
 0x1ed   :  { %v237_v32 = vadd.f32 %v431_v30, %v236_v31  ;;  %v485_v33 = vpop.f32.mrb[1].mxu1 }
 0x1ef   :  { %499 = vmatmul.mubr.msk.f32.vlgmr.msra.gmra.mrb[2].mxu0 %vm166_vm2, %v237_v32 }
 0x2c2   :  { %v315_v34 = vpop.f32.mrb[2].mxu0 }
 0x2c3   :  { %v319_v35 = vsub.f32 %v237_v32, %v315_v34  ;;  %v500_v36 = vpop.f32.mrb[3].mxu0 }
 0x2c5   :  { %v320_v37 = vmul.f32 %v319_v35, %v319_v35 }
 0x2c7   :  { %514 = vmatmul.mubr.msk.f32.vlgmr.msra.gmra.mrb[2].mxu1 %vm166_vm2, %v320_v37 }
 0x39a   :  { %v390_v38 = vpop.f32.mrb[2].mxu1 }
 0x39b   :  { %v391_v39 = vadd.f32 1e-05, %v390_v38  ;;  %v515_v40 = vpop.f32.mrb[3].mxu1 }
 0x39d   :  { %555 = vrsqrt.f32 %v391_v39 }
 0x3a7   :  { %v556_v41 = vpop.eup %555 }
 0x3a8   :  { %v395_v43 = vmul.f32 %v556_v41, %v319_v35 }
 0x3aa   :  { %v403_v45 = vmul.f32 %v435_v42, %v395_v43 }
 0x3ac   :  { %v411_v46 = vadd.f32 %v436_v44, %v403_v45 }
 0x3ae   :  { %412 = vst.msk [vmem:[#allocation8] sm:$0xff] %vm166_vm2, %v411_v46 }
 0x3af   :  { %634 = shalt.err (!%p631_p0)
}
 0x3b0   :  { %s635_s25 = scalar_lea.hbm %s821_s8, 128 }
 0x3b1   :  { %p636_p1 = scmp.ne.s32.totalorder %s821_s8, %s635_s25  ;;  %p639_p2 = scmp.lt.u32.totalorder %s635_s25, %s821_s8 }
 0x3b3   :  { %p641_p3 = pnand %p639_p2, %p636_p1 }
 0x3b5   :  { %644 = shalt.err (!%p641_p3)
}
 0x3b6   :  { %422 = dma.vmem_to_hbm [thread:$0]  %s420_s7, 128, %s821_s8, [#allocation4]  }
 0x3b7   :  { %649 = dma.done.wait [#allocation4], 128  }
 0x3b8   :  { %650 = vsyncadd [#allocation4], 4294967168 }
 0x3b9   :  { %426 = vsyncpa [#allocation3], 1 }
 0x3ba   :  { %427 = vsyncpa [#allocation6], 1 }
 0x3bb   :  { %428 = vsyncpa [#allocation4], 1 }

</bundles_post_ra>
